<compile_context>
chip_gen: v6e
topology: v6e:2x2x1
jax: 0.10.0
libtpu: 0.0.40
codegen_flags: <defaults>
</compile_context>

<pallas_src>
import jax
import jax.numpy as jnp
from jax.experimental import pallas as pl
from jax.experimental.pallas import tpu as pltpu

NEG_SLOPE = 0.01  # PyTorch nn.LeakyReLU() default


def _round_up(x, m):
    return ((x + m - 1) // m) * m


def conv_block_kernel(p_ref, w_ref, b_ref, o_ref):
    # p_ref: (1, TM, Kp)   bf16 im2col patch rows for this (batch, row-tile)
    # w_ref: (Kp, Cp)      bf16 packed weights (K and Cout zero-padded)
    # b_ref: (1, Cp)       f32 bias (zero-padded)
    # o_ref: (1, TM, Cp)   bf16 lane-dense output tile
    acc = jnp.dot(p_ref[0], w_ref[...], preferred_element_type=jnp.float32)
    acc = acc + b_ref[...]                            # (TM, Cp) + (1, Cp) broadcast
    acc = jnp.where(acc >= 0, acc, NEG_SLOPE * acc)   # LeakyReLU
    o_ref[0] = acc.astype(o_ref.dtype)


def _pick_tm(hw, kp, cp, budget_bytes):
    """Largest multiple-of-256 row tile whose working set fits the VMEM budget."""
    if hw <= 256:
        return _round_up(hw, 8)
    fixed = 2 * kp * cp * 2 + cp * 4  # resident weights (double-buffered) + bias

    def need(tm):
        # double-buffered bf16 patches + double-buffered bf16 out + f32 acc
        return fixed + 2 * tm * kp * 2 + 2 * tm * cp * 2 + tm * cp * 4

    tm = 256
    for cand in range(2048, 255, -256):
        if cand <= _round_up(hw, 256) and need(cand) <= budget_bytes:
            tm = cand
            break
    return tm


def conv_block_forward(x_nchw, weight_oihw, bias):
    """Conv2d(in_feat, out_feat, k=3, s=1, p=1) + LeakyReLU, PyTorch NCHW I/O."""
    N, Cin, H, W = x_nchw.shape
    Cout = weight_oihw.shape[0]
    HW = H * W
    K9 = 9 * Cin
    Kp = _round_up(K9, 16)      # bf16 sublane packing for the RHS (not 128!)
    Cp = _round_up(Cout, 128)   # lane-dense output columns

    # Per-step VMEM budget: sized for v7x (64 MiB physical), generous on v5e/v6e.
    TM = _pick_tm(HW, Kp, Cp, 32 * 1024 * 1024)
    HWp = _round_up(HW, TM)
    grid = (N, HWp // TM)

    # ---- wrapper-side glue (plain JAX): layout, halo pad, im2col, packing ----
    x_nhwc = jnp.transpose(x_nchw, (0, 2, 3, 1))                  # (N, H, W, Cin)
    x_pad = jnp.pad(x_nhwc, ((0, 0), (1, 1), (1, 1), (0, 0)))     # (N, H+2, W+2, Cin)
    # im2col with tap ordering (dy, dx, cin) matching the HWIO weight flattening.
    taps = [x_pad[:, dy:dy + H, dx:dx + W, :]
            for dy in range(3) for dx in range(3)]
    patches = jnp.concatenate(taps, axis=-1).reshape(N, HW, K9)
    patches = jnp.pad(patches, ((0, 0), (0, HWp - HW), (0, Kp - K9)))
    patches = patches.astype(jnp.bfloat16)
    # TODO(synk): for strongly memory-bound shapes, fuse im2col fully into the
    # kernel (halo-row DMA + 9 K=Cin matmuls) instead of materializing patches.

    # OIHW -> HWIO -> (9*Cin, Cout) -> zero-pad to (Kp, Cp), cast to bf16.
    w_mat = jnp.transpose(weight_oihw, (2, 3, 1, 0)).reshape(K9, Cout)
    w_mat = jnp.pad(w_mat, ((0, Kp - K9), (0, Cp - Cout))).astype(jnp.bfloat16)
    b_pad = jnp.pad(bias, (0, Cp - Cout)).reshape(1, Cp).astype(jnp.float32)

    cost = pl.CostEstimate(
        flops=2 * N * HWp * Kp * Cp,
        transcendentals=0,
        bytes_accessed=(patches.size * 2 + w_mat.size * 2
                        + b_pad.size * 4 + N * HWp * Cp * 2),
    )

    out_padded = pl.pallas_call(
        conv_block_kernel,
        out_shape=jax.ShapeDtypeStruct((N, HWp, Cp), jnp.bfloat16),
        grid_spec=pltpu.PrefetchScalarGridSpec(
            num_scalar_prefetch=0,
            grid=grid,
            in_specs=[
                pl.BlockSpec((1, TM, Kp), lambda n, m: (n, m, 0)),
                pl.BlockSpec((Kp, Cp), lambda n, m: (0, 0)),
                pl.BlockSpec((1, Cp), lambda n, m: (0, 0)),
            ],
            out_specs=pl.BlockSpec((1, TM, Cp), lambda n, m: (n, m, 0)),
        ),
        compiler_params=pltpu.CompilerParams(
            dimension_semantics=("parallel", "parallel"),
            vmem_limit_bytes=40 * 1024 * 1024,
            allow_input_fusion=[True, False, False],
        ),
        cost_estimate=cost,
    )(patches, w_mat, b_pad)

    # Undo padding/layout on the bf16 slab; cast to input dtype last.
    out_nhwc = out_padded[:, :HW, :Cout].reshape(N, H, W, Cout)
    return jnp.transpose(out_nhwc, (0, 3, 1, 2)).astype(x_nchw.dtype)


if __name__ == "__main__":
    key = jax.random.PRNGKey(0)
    k_x, k_w, k_b = jax.random.split(key, 3)

    N, Cin, Cout, H, W = 2, 4, 8, 16, 16

    x = jax.random.normal(k_x, (N, Cin, H, W), dtype=jnp.float32)
    # Deterministic synthetic params (PyTorch Conv2d weight shape: (out, in, 3, 3)).
    weight = jax.random.normal(k_w, (Cout, Cin, 3, 3), dtype=jnp.float32) * 0.1
    bias = jax.random.normal(k_b, (Cout,), dtype=jnp.float32) * 0.1

    out = jax.block_until_ready(conv_block_forward(x, weight, bias))

    # Reference: XLA conv on the same bf16-cast operands with f32 accumulation
    # (the kernel feeds the MXU bf16), then bias + LeakyReLU(0.01).
    ref = jax.lax.conv_general_dilated(
        x.astype(jnp.bfloat16), weight.astype(jnp.bfloat16),
        window_strides=(1, 1), padding=((1, 1), (1, 1)),
        dimension_numbers=("NCHW", "OIHW", "NCHW"),
        preferred_element_type=jnp.float32)
    ref = ref + bias.reshape(1, Cout, 1, 1)
    ref = jnp.where(ref >= 0, ref, NEG_SLOPE * ref)

    assert out.shape == (N, Cout, H, W)
    # Kernel output is bf16 (per perf review) -> allow bf16-level tolerance.
    assert jnp.allclose(out, ref, atol=2e-2, rtol=2e-2), "mismatch vs reference conv"
    print("KERNEL_OK")
</pallas_src>

<mosaic_0001>
module attributes {stable_mosaic.version = 11 : i64} {
  func.func @conv_block_kernel(%arg0: i32, %arg1: i32, %arg2: memref<1x256x48xbf16, #tpu.memory_space<vmem>>, %arg3: memref<48x128xbf16, #tpu.memory_space<vmem>>, %arg4: memref<1x128xf32, #tpu.memory_space<vmem>>, %arg5: memref<1x256x128xbf16, #tpu.memory_space<vmem>>) attributes {dimension_semantics = [#tpu.dimension_semantics<parallel>, #tpu.dimension_semantics<parallel>], iteration_bounds = array<i64: 2, 1>, scalar_prefetch = 0 : i64, scratch_operands = 0 : i64, tpu.core_type = #tpu.core_type<tc>, window_params = [{transform_indices = @transform_0, window_bounds = array<i64: 1, 256, 48>}, {pipeline_mode = #tpu.pipeline_mode<synchronous>, transform_indices = @transform_1, window_bounds = array<i64: 48, 128>}, {pipeline_mode = #tpu.pipeline_mode<synchronous>, transform_indices = @transform_2, window_bounds = array<i64: 1, 128>}, {transform_indices = @transform_3, window_bounds = array<i64: 1, 256, 128>}]} {
    %c0 = arith.constant 0 : index
    %c0_0 = arith.constant 0 : index
    %c0_1 = arith.constant 0 : index
    %0 = vector.load %arg2[%c0, %c0_0, %c0_1] : memref<1x256x48xbf16, #tpu.memory_space<vmem>>, vector<1x256x48xbf16>
    %1 = vector.shape_cast %0 : vector<1x256x48xbf16> to vector<256x48xbf16>
    %c0_2 = arith.constant 0 : index
    %c0_3 = arith.constant 0 : index
    %2 = vector.load %arg3[%c0_2, %c0_3] : memref<48x128xbf16, #tpu.memory_space<vmem>>, vector<48x128xbf16>
    %cst = arith.constant dense<0.000000e+00> : vector<256x128xf32>
    %3 = tpu.matmul %1, %2, %cst {dimension_numbers = #tpu.dot_dimension_numbers<[1], [0], [0], [1], [0, 0, 1, 1], [], []>} : vector<256x48xbf16>, vector<48x128xbf16>, vector<256x128xf32> -> vector<256x128xf32>
    %c0_4 = arith.constant 0 : index
    %c0_5 = arith.constant 0 : index
    %4 = vector.load %arg4[%c0_4, %c0_5] : memref<1x128xf32, #tpu.memory_space<vmem>>, vector<1x128xf32>
    %5 = vector.broadcast %4 : vector<1x128xf32> to vector<256x128xf32>
    %6 = arith.addf %3, %5 : vector<256x128xf32>
    %cst_6 = arith.constant 0.000000e+00 : f32
    %7 = vector.broadcast %cst_6 : f32 to vector<256x128xf32>
    %8 = arith.cmpf oge, %6, %7 : vector<256x128xf32>
    %cst_7 = arith.constant 0.00999999977 : f32
    %9 = vector.broadcast %cst_7 : f32 to vector<256x128xf32>
    %10 = arith.mulf %9, %6 : vector<256x128xf32>
    %11 = arith.select %8, %6, %10 : vector<256x128xi1>, vector<256x128xf32>
    %12 = arith.truncf %11 : vector<256x128xf32> to vector<256x128xbf16>
    %c0_8 = arith.constant 0 : index
    %c0_9 = arith.constant 0 : index
    %c0_10 = arith.constant 0 : index
    %13 = vector.load %arg5[%c0_8, %c0_9, %c0_10] : memref<1x256x128xbf16, #tpu.memory_space<vmem>>, vector<1x256x128xbf16>
    %14 = vector.shape_cast %13 : vector<1x256x128xbf16> to vector<256x128xbf16>
    %15 = vector.shape_cast %12 : vector<256x128xbf16> to vector<1x256x128xbf16>
    tpu.vector_store %arg5[%c0_8, %c0_9, %c0_10], %15 {strides = array<i32>} : memref<1x256x128xbf16, #tpu.memory_space<vmem>>, vector<1x256x128xbf16>,
    return
  }
  func.func @transform_0(%arg0: i32, %arg1: i32) -> (i32, i32, i32) {
    %c0_i32 = arith.constant 0 : i32
    %c0_i32_0 = arith.constant 0 : i32
    return %arg0, %arg1, %c0_i32 : i32, i32, i32
  }
  func.func @transform_1(%arg0: i32, %arg1: i32) -> (i32, i32) {
    %c0_i32 = arith.constant 0 : i32
    %c0_i32_0 = arith.constant 0 : i32
    %c0_i32_1 = arith.constant 0 : i32
    return %c0_i32, %c0_i32_0 : i32, i32
  }
  func.func @transform_2(%arg0: i32, %arg1: i32) -> (i32, i32) {
    %c0_i32 = arith.constant 0 : i32
    %c0_i32_0 = arith.constant 0 : i32
    %c0_i32_1 = arith.constant 0 : i32
    return %c0_i32, %c0_i32_0 : i32, i32
  }
  func.func @transform_3(%arg0: i32, %arg1: i32) -> (i32, i32, i32) {
    %c0_i32 = arith.constant 0 : i32
    %c0_i32_0 = arith.constant 0 : i32
    return %arg0, %arg1, %c0_i32 : i32, i32, i32
  }
}

</mosaic_0001>

<bundles_post_ra>
// kernel: tpu_custom_call.1
= control target key start
LH: loop header
LB: loop body
LE: loop exit
PB: predicated region body
PF: predicated region fallthrough
CT: control target
= control target key end

     0   :  { %8 = vsyncpa [#allocation3], 0  ;;  %s1577_s0 = inlined_call_operand.vmem [shape: bf16[2,256,48], index: 0, kind: input, shape index: {}]   ;;  %s1578_s1 = inlined_call_operand.vmem [shape: bf16[48,128], index: 1, kind: input, shape index: {}]   ;;  %s1579_s2 = inlined_call_operand.vmem [shape: f32[1,128], index: 2, kind: input, shape index: {}]   ;;  %s1580_s3 = inlined_call_operand.hbm [shape: bf16[2,256,128], index: 3, kind: output, shape index: {}]  }
   0x1   :  { %10 = vsyncpa [#allocation3 + $0x1], 0  ;;  %s1355_s12 = smov 0   ;;  %s1357_s13 = smov 0  }
   0x2   :  { %s1359_s14 = smov 0   ;;  %s1361_s15 = smov 0  }
   0x3   :  { %s1363_s16 = smov 0   ;;  %s1365_s17 = smov 0  }
   0x4 LB: > { %s905_s18 = sadd.s32 4294967295, %s1330_s17   ;;  %s906_s19 = sadd.s32 4294967294, %s1330_s17   ;;  %s1330_s17 = sphi %s1365_s17, %s16_s17   ;;  %s1326_s16 = sphi %s1363_s16, %s1587_s16   ;;  %s1322_s15 = sphi %s1361_s15, %s1586_s15   ;;  %s1318_s14 = sphi %s1359_s14, %s1585_s14   ;;  %s1314_s13 = sphi %s1357_s13, %s1584_s13   ;;  %s1310_s12 = sphi %s1355_s12, %s1583_s12  }
   0x5   : > { %s28_s20 = sadd.s32 1, %s1326_s16  ;;  %s107_s21 = sadd.s32 1, %s1318_s14 }
   0x6   : > { %p30_p0 = scmp.ge.s32.totalorder %s28_s20, 2  ;;  %p117_p1 = scmp.ne.s32.totalorder %s1318_s14, %s1314_s13 }
   0x7   : > { %p118_p2 = scmp.eq.s32.totalorder %s905_s18, 1  ;;  %p123_p3 = scmp.ne.s32.totalorder %s1314_s13, %s1310_s12 }
   0x8   : > { %s1589_s20 = smov (%p30_p0, %s28_s20), 0  ;;  %p124_p5 = scmp.eq.s32.totalorder %s906_s19, 1 }
   0x9   : > { %p1395_p4 = por %p118_p2, %p117_p1  ;;  %s102_s23 = ssub.s32 %s1326_s16, %s1589_s20 }
   0xa   : > { %p909_p6 = scmp.ge.s32.totalorder %s1330_s17, 1  ;;  %p105_p7 = scmp.eq.s32.totalorder %s102_s23, 0 }
   0xb   : > { %p1402_p8 = por %p124_p5, %p123_p3  ;;  %p161_p9 = scmp.lt.s32.totalorder %s1330_s17, 3 }
   0xc   : > { %s1408_s25 = scalar_select %p105_p7, %s1318_s14, %s107_s21  }
   0xd   : > { %p162_p10 = pnand %p909_p6, %p161_p9 }
   0xe   : > { %p190_p11 = scmp.lt.s32.totalorder (!%p162_p10), %s1322_s15, 1  ;;  %s186_s18 = sand.u32 (!%p162_p10), 1, %s1314_s13  }
   0xf   : > { %165 = sbr.rel (%p162_p10) target bundleno = 281 (0x119), region = 32  ;;  %s910_s19 = sshll.u32 (!%p162_p10), %s186_s18, 7 }
  0x10   : > { %s1477_s21 = scalar_lea.vmem (!%p162_p10), [#allocation2], %s910_s19  ;;  %s1019_s23 = sshll.u32 (!%p162_p10), %s1322_s15, 11 }
  0x11   : > { %s826_s26 = sshll.u32 (!%p162_p10), %s1477_s21, 4  ;;  %s1524_s29 = scalar_lea.hbm (!%p162_p10), %s1580_s3, %s1019_s23  ;;  %s1526_s26 = int_to_ptr.vmem [resolvable:$true] %s826_s26 }
  0x12   : > { %s1332_s4 = smov (!%p162_p10), [#allocation2]  }
  0x13   : > { %s1258_s5 = sshll.u32 (!%p162_p10), %s1332_s4, 4  ;;  %s1259_s5 = int_to_ptr.vmem [resolvable:$false] %s1258_s5 }
  0x14   : > { %v1235_v0 = vld [vmem:[%s1578_s1 + $0x10] sm:$0xff]   ;;  %v1236_v1 = vld [vmem:[%s1578_s1 + $0x8] sm:$0xff]   ;;  %s191_s30 = scalar_select %p190_p11, %s1322_s15, 1  ;;  %v1237_v2 = vld [vmem:[%s1578_s1] sm:$0xff]   ;;  %vm344_vm0 = vcmask 392192  }
  0x15   : > { %1134 = vmatprep.subr.bf16.mxu0 %v1235_v0  ;;  %1172 = vmatprep.subr.bf16.mxu1 %v1235_v0  ;;  %v1461_v19 = vld [vmem:[%s1579_s2] ss:$0 sm:$0xff]  ;;  %s1532_s15 = scalar_lea.sflag [#allocation3], %s186_s18  ;;  %p1261_p1 = scmp.lt.s32.totalorder %s1526_s26, %s1259_s5 }
  0x16   : > { %1135 = vmatpush3.bf16.msra.mxu0 %v1235_v0  ;;  %1175 = vmatpush3.bf16.msra.mxu1 %v1235_v0  ;;  %s986_s6 = sshll.u32 %s191_s30, 7  ;;  %s1254_s30 = scalar_lea.vmem %s1526_s26, 2048 }
  0x17   : > { %1136 = vmatprep.subr.bf16.mxu0 %v1236_v1  ;;  %1173 = vmatprep.subr.bf16.mxu1 %v1236_v1  ;;  %s1424_s9 = scalar_lea.vmem %s1577_s0, %s986_s6  ;;  %p1255_p12 = scmp.ne.s32.totalorder %s1526_s26, %s1254_s30 }
  0x18   : > { %v1238_v3 = vld [vmem:[%s1424_s9] sm:$0xff]   ;;  %v1240_v5 = vld [vmem:[%s1424_s9 + $0x8] sm:$0xff]   ;;  %v1242_v7 = vld [vmem:[%s1424_s9 + $0x10] sm:$0xff]   ;;  %s1260_s6 = scalar_lea.vmem %s1259_s5, 4096 }
  0x19   : > { %v1239_v4 = vld [vmem:[%s1424_s9 + $0x40] sm:$0xff]   ;;  %1140 = vmatprep.mubr.msk.bf16.mxu0 %vm344_vm0, %v1238_v3  ;;  %v1241_v6 = vld [vmem:[%s1424_s9 + $0x48] sm:$0xff]   ;;  %v1243_v8 = vld [vmem:[%s1424_s9 + $0x50] sm:$0xff]   ;;  %p1256_p13 = pnand %p1255_p12, %p1395_p4  ;;  %p1262_p2 = scmp.lt.s32.totalorder %s1260_s6, %s1254_s30 }
  0x1a   : > { %1137 = vmatpush3.bf16.msra.mxu0 %v1236_v1  ;;  %1176 = vmatpush3.bf16.msra.mxu1 %v1236_v1  ;;  %v1244_v9 = vld [vmem:[%s1424_s9 + $0x18] sm:$0xff]   ;;  %v1246_v11 = vld [vmem:[%s1424_s9 + $0x20] sm:$0xff]   ;;  %v1248_v13 = vld [vmem:[%s1424_s9 + $0x28] sm:$0xff]  }
  0x1b   : > { %1138 = vmatprep.subr.bf16.mxu0 %v1237_v2  ;;  %1174 = vmatprep.subr.bf16.mxu1 %v1237_v2  ;;  %v1245_v10 = vld [vmem:[%s1424_s9 + $0x58] sm:$0xff]   ;;  %v1247_v12 = vld [vmem:[%s1424_s9 + $0x60] sm:$0xff]   ;;  %v1249_v14 = vld [vmem:[%s1424_s9 + $0x68] sm:$0xff]   ;;  %p1257_p0 = pneg %p1256_p13  ;;  %p1263_p3 = por %p1262_p2, %p1261_p1 }
  0x1c   : > { %1156 = vmatprep.mubr.msk.bf16.mxu1 %vm344_vm0, %v1239_v4  ;;  %v1250_v15 = vld [vmem:[%s1424_s9 + $0x30] sm:$0xff]   ;;  %v1252_v17 = vld [vmem:[%s1424_s9 + $0x38] sm:$0xff]  }
  0x1d   : > { %v1251_v16 = vld [vmem:[%s1424_s9 + $0x70] sm:$0xff]   ;;  %v1253_v18 = vld [vmem:[%s1424_s9 + $0x78] sm:$0xff]   ;;  %p1264_p5 = pnand %p1263_p3, %p1257_p0 }
  0x1e   : > { %1139 = vmatpush3.bf16.msra.mxu0 %v1237_v2  ;;  %1177 = vmatpush3.bf16.msra.mxu1 %v1237_v2 }
  0x21   : > { %1141 = vmatmul.mubr.msk.bf16.vlgmr.msra.gmra.mxu0 %vm344_vm0, %v1240_v5  ;;  %1157 = vmatmul.mubr.msk.bf16.vlgmr.msra.gmra.mxu1 %vm344_vm0, %v1241_v6 }
  0x22   : > { %1144 = vmatprep.mubr.msk.bf16.mxu0 %vm344_vm0, %v1242_v7  ;;  %1160 = vmatprep.mubr.msk.bf16.mxu1 %vm344_vm0, %v1243_v8 }
  0x29   : > { %1145 = vmatmul.mubr.msk.bf16.gmra.mxu0 %vm344_vm0, %v1244_v9  ;;  %1161 = vmatmul.mubr.msk.bf16.gmra.mxu1 %vm344_vm0, %v1245_v10 }
  0x2a   : > { %1148 = vmatprep.mubr.msk.bf16.mxu0 %vm344_vm0, %v1246_v11  ;;  %1164 = vmatprep.mubr.msk.bf16.mxu1 %vm344_vm0, %v1247_v12 }
  0x31   : > { %1149 = vmatmul.mubr.msk.bf16.gmra.mxu0 %vm344_vm0, %v1248_v13  ;;  %1165 = vmatmul.mubr.msk.bf16.gmra.mxu1 %vm344_vm0, %v1249_v14 }
  0x32   : > { %1152 = vmatprep.mubr.msk.bf16.mxu0 %vm344_vm0, %v1250_v15  ;;  %1168 = vmatprep.mubr.msk.bf16.mxu1 %vm344_vm0, %v1251_v16 }
  0x39   : > { %1153 = vmatmul.mubr.msk.bf16.gmra.mxu0 %vm344_vm0, %v1252_v17  ;;  %1169 = vmatmul.mubr.msk.bf16.gmra.mxu1 %vm344_vm0, %v1253_v18 }
  0xe1   : > { %v1142_v20 = vpop.f32.mrf.mxu0  ;;  %v1158_v21 = vpop.f32.mrf.mxu1 }
  0xe2   : > { %v436_v22 = vadd.f32 %v1142_v20, %v1461_v19  ;;  %v500_v23 = vadd.f32 %v1158_v21, %v1461_v19 }
  0xe3   : > { %v427_v24 = vpop.f32.mrf.mxu0  ;;  %v491_v25 = vpop.f32.mrf.mxu1 }
  0xe4   : > { %vm556_vm1 = vcmp.ge.f32.partialorder %v436_v22, 0.0  ;;  %v588_v26 = vmul.f32 0.01, %v436_v22  ;;  %vm572_vm2 = vcmp.ge.f32.partialorder %v500_v23, 0.0  ;;  %v604_v27 = vmul.f32 0.01, %v500_v23 }
  0xe5   : > { %v428_v28 = vadd.f32 %v1461_v19, %v427_v24  ;;  %v492_v29 = vadd.f32 %v1461_v19, %v491_v25  ;;  %v1143_v30 = vpop.f32.mrf.mxu0  ;;  %v1159_v31 = vpop.f32.mrf.mxu1 }
  0xe6   : > { %v620_v32 = vsel %vm556_vm1, %v436_v22, %v588_v26  ;;  %v439_v33 = vadd.f32 %v1143_v30, %v1461_v19  ;;  %v503_v34 = vadd.f32 %v1159_v31, %v1461_v19  ;;  %v636_v35 = vsel %vm572_vm2, %v500_v23, %v604_v27 }
  0xe7   : > { %vm554_vm3 = vcmp.ge.f32.partialorder %v428_v28, 0.0  ;;  %v586_v36 = vmul.f32 0.01, %v428_v28  ;;  %vm570_vm4 = vcmp.ge.f32.partialorder %v492_v29, 0.0  ;;  %v430_v37 = vpop.f32.mrf.mxu0  ;;  %v494_v38 = vpop.f32.mrf.mxu1  ;;  %v602_v42 = vmul.f32 0.01, %v492_v29 }
  0xe8   : > { %vm557_vm5 = vcmp.ge.f32.partialorder %v439_v33, 0.0  ;;  %v589_v39 = vmul.f32 0.01, %v439_v33  ;;  %vm573_vm6 = vcmp.ge.f32.partialorder %v503_v34, 0.0  ;;  %v605_v40 = vmul.f32 0.01, %v503_v34 }
  0xe9   : > { %v618_v41 = vsel %vm554_vm3, %v428_v28, %v586_v36  ;;  %v431_v43 = vadd.f32 %v1461_v19, %v430_v37  ;;  %v495_v44 = vadd.f32 %v1461_v19, %v494_v38  ;;  %v1146_v45 = vpop.f32.mrf.mxu0  ;;  %v1162_v46 = vpop.f32.mrf.mxu1  ;;  %v634_v58 = vsel %vm570_vm4, %v492_v29, %v602_v42 }
  0xea   : > { %v621_v47 = vsel %vm557_vm5, %v439_v33, %v589_v39  ;;  %v637_v48 = vsel %vm573_vm6, %v503_v34, %v605_v40  ;;  %v452_v49 = vadd.f32 %v1146_v45, %v1461_v19  ;;  %v516_v50 = vadd.f32 %v1162_v46, %v1461_v19 }
  0xeb   : > { %v1028_v51 = vpack.c.bf16 %v621_v47, %v620_v32  ;;  %v1068_v52 = vpack.c.bf16 %v637_v48, %v636_v35  ;;  %vm555_vm7 = vcmp.ge.f32.partialorder %v431_v43, 0.0  ;;  %v587_v53 = vmul.f32 0.01, %v431_v43  ;;  %v443_v54 = vpop.f32.mrf.mxu0  ;;  %v507_v55 = vpop.f32.mrf.mxu1 }
  0xec   : > { %vm571_vm8 = vcmp.ge.f32.partialorder %v495_v44, 0.0  ;;  %v603_v56 = vmul.f32 0.01, %v495_v44  ;;  %vm560_vm9 = vcmp.ge.f32.partialorder %v452_v49, 0.0  ;;  %v592_v57 = vmul.f32 0.01, %v452_v49 }
  0xed   : > { %1100 = vst [vmem:[%s1477_s21 + $0x8] sm:$0xff] %v1028_v51   ;;  %1108 = vst [vmem:[%s1477_s21 + $0x48] sm:$0xff] %v1068_v52   ;;  %v619_v59 = vsel %vm555_vm7, %v431_v43, %v587_v53  ;;  %v608_v60 = vmul.f32 0.01, %v516_v50  ;;  %v444_v61 = vadd.f32 %v1461_v19, %v443_v54  ;;  %v1147_v62 = vpop.f32.mrf.mxu0  ;;  %v1163_v63 = vpop.f32.mrf.mxu1  ;;  %vm576_vm10 = vcmp.ge.f32.partialorder %v516_v50, 0.0 }
  0xee   : > { %v1023_v0 = vpack.c.bf16 %v619_v59, %v618_v41  ;;  %v635_v1 = vsel %vm571_vm8, %v495_v44, %v603_v56  ;;  %v508_v2 = vadd.f32 %v1461_v19, %v507_v55  ;;  %v624_v4 = vsel %vm560_vm9, %v452_v49, %v592_v57 }
  0xef   : > { %v1063_v3 = vpack.c.bf16 %v635_v1, %v634_v58  ;;  %vm558_vm11 = vcmp.ge.f32.partialorder %v444_v61, 0.0  ;;  %v590_v5 = vmul.f32 0.01, %v444_v61  ;;  %v446_v6 = vpop.f32.mrf.mxu0  ;;  %v510_v7 = vpop.f32.mrf.mxu1  ;;  %v455_v9 = vadd.f32 %v1147_v62, %v1461_v19 }
  0xf0   : > { %1024 = vst [vmem:[%s1477_s21] sm:$0xff] %v1023_v0   ;;  %vm574_vm12 = vcmp.ge.f32.partialorder %v508_v2, 0.0  ;;  %v606_v8 = vmul.f32 0.01, %v508_v2  ;;  %v519_v10 = vadd.f32 %v1163_v63, %v1461_v19  ;;  %v640_v11 = vsel %vm576_vm10, %v516_v50, %v608_v60 }
  0xf1   : > { %1107 = vst [vmem:[%s1477_s21 + $0x40] sm:$0xff] %v1063_v3   ;;  %v622_v12 = vsel %vm558_vm11, %v444_v61, %v590_v5  ;;  %v447_v13 = vadd.f32 %v1461_v19, %v446_v6  ;;  %v511_v14 = vadd.f32 %v1461_v19, %v510_v7  ;;  %v1150_v15 = vpop.f32.mrf.mxu0  ;;  %v1166_v16 = vpop.f32.mrf.mxu1  ;;  %vm561_vm13 = vcmp.ge.f32.partialorder %v455_v9, 0.0 }
  0xf2   : > { %v638_v17 = vsel %vm574_vm12, %v508_v2, %v606_v8  ;;  %v593_v18 = vmul.f32 0.01, %v455_v9  ;;  %vm577_vm14 = vcmp.ge.f32.partialorder %v519_v10, 0.0  ;;  %v609_v20 = vmul.f32 0.01, %v519_v10 }
  0xf3   : > { %vm559_vm15 = vcmp.ge.f32.partialorder %v447_v13, 0.0  ;;  %v591_v21 = vmul.f32 0.01, %v447_v13  ;;  %vm575_vm0 = vcmp.ge.f32.partialorder %v511_v14, 0.0  ;;  %v459_v22 = vpop.f32.mrf.mxu0  ;;  %v523_v23 = vpop.f32.mrf.mxu1  ;;  %v607_v25 = vmul.f32 0.01, %v511_v14 }
  0xf4   : > { %v625_v24 = vsel %vm561_vm13, %v455_v9, %v593_v18  ;;  %v468_v26 = vadd.f32 %v1150_v15, %v1461_v19  ;;  %v532_v27 = vadd.f32 %v1166_v16, %v1461_v19  ;;  %v641_v29 = vsel %vm577_vm14, %v519_v10, %v609_v20 }
  0xf5   : > { %v1038_v28 = vpack.c.bf16 %v625_v24, %v624_v4  ;;  %v623_v30 = vsel %vm559_vm15, %v447_v13, %v591_v21  ;;  %v460_v31 = vadd.f32 %v1461_v19, %v459_v22  ;;  %v1151_v32 = vpop.f32.mrf.mxu0  ;;  %v1167_v33 = vpop.f32.mrf.mxu1  ;;  %v1078_v34 = vpack.c.bf16 %v641_v29, %v640_v11 }
  0xf6   : > { %v1033_v35 = vpack.c.bf16 %v623_v30, %v622_v12  ;;  %v639_v36 = vsel %vm575_vm0, %v511_v14, %v607_v25  ;;  %vm564_vm1 = vcmp.ge.f32.partialorder %v468_v26, 0.0  ;;  %v596_v38 = vmul.f32 0.01, %v468_v26 }
  0xf7   : > { %1102 = vst [vmem:[%s1477_s21 + $0x18] sm:$0xff] %v1038_v28   ;;  %v1073_v37 = vpack.c.bf16 %v639_v36, %v638_v17  ;;  %vm580_vm2 = vcmp.ge.f32.partialorder %v532_v27, 0.0  ;;  %v612_v39 = vmul.f32 0.01, %v532_v27  ;;  %v462_v40 = vpop.f32.mrf.mxu0  ;;  %v526_v41 = vpop.f32.mrf.mxu1  ;;  %1110 = vst [vmem:[%s1477_s21 + $0x58] sm:$0xff] %v1078_v34   ;;  %vm562_vm3 = vcmp.ge.f32.partialorder %v460_v31, 0.0 }
  0xf8   : > { %1101 = vst [vmem:[%s1477_s21 + $0x10] sm:$0xff] %v1033_v35   ;;  %v594_v42 = vmul.f32 0.01, %v460_v31  ;;  %v524_v43 = vadd.f32 %v1461_v19, %v523_v23  ;;  %v471_v44 = vadd.f32 %v1151_v32, %v1461_v19  ;;  %v628_v45 = vsel %vm564_vm1, %v468_v26, %v596_v38 }
  0xf9   : > { %1109 = vst [vmem:[%s1477_s21 + $0x50] sm:$0xff] %v1073_v37   ;;  %v535_v46 = vadd.f32 %v1167_v33, %v1461_v19  ;;  %v463_v47 = vadd.f32 %v1461_v19, %v462_v40  ;;  %v1154_v48 = vpop.f32.mrf.mxu0  ;;  %v1170_v49 = vpop.f32.mrf.mxu1  ;;  %v644_v50 = vsel %vm580_vm2, %v532_v27, %v612_v39  ;;  %v527_v58 = vadd.f32 %v1461_v19, %v526_v41 }
  0xfa   : > { %v626_v51 = vsel %vm562_vm3, %v460_v31, %v594_v42  ;;  %vm578_vm4 = vcmp.ge.f32.partialorder %v524_v43, 0.0  ;;  %vm565_vm5 = vcmp.ge.f32.partialorder %v471_v44, 0.0  ;;  %v597_v52 = vmul.f32 0.01, %v471_v44 }
  0xfb   : > { %vm581_vm6 = vcmp.ge.f32.partialorder %v535_v46, 0.0  ;;  %v613_v53 = vmul.f32 0.01, %v535_v46  ;;  %vm563_vm7 = vcmp.ge.f32.partialorder %v463_v47, 0.0  ;;  %v475_v54 = vpop.f32.mrf.mxu0  ;;  %v539_v55 = vpop.f32.mrf.mxu1  ;;  %v610_v56 = vmul.f32 0.01, %v524_v43 }
  0xfc   : > { %v595_v57 = vmul.f32 0.01, %v463_v47  ;;  %v484_v59 = vadd.f32 %v1154_v48, %v1461_v19  ;;  %v629_v60 = vsel %vm565_vm5, %v471_v44, %v597_v52  ;;  %v548_v62 = vadd.f32 %v1170_v49, %v1461_v19 }
  0xfd   : > { %v645_v61 = vsel %vm581_vm6, %v535_v46, %v613_v53  ;;  %v476_v63 = vadd.f32 %v1461_v19, %v475_v54  ;;  %v1155_v0 = vpop.f32.mrf.mxu0  ;;  %v1171_v1 = vpop.f32.mrf.mxu1  ;;  %v1048_v2 = vpack.c.bf16 %v629_v60, %v628_v45  ;;  %vm579_vm8 = vcmp.ge.f32.partialorder %v527_v58, 0.0 }
  0xfe   : > { %v1088_v3 = vpack.c.bf16 %v645_v61, %v644_v50  ;;  %v627_v4 = vsel %vm563_vm7, %v463_v47, %v595_v57  ;;  %v611_v6 = vmul.f32 0.01, %v527_v58  ;;  %v600_v7 = vmul.f32 0.01, %v484_v59 }
  0xff   : > { %v1043_v5 = vpack.c.bf16 %v627_v4, %v626_v51  ;;  %v642_v8 = vsel %vm578_vm4, %v524_v43, %v610_v56  ;;  %1104 = vst [vmem:[%s1477_s21 + $0x28] sm:$0xff] %v1048_v2   ;;  %vm568_vm9 = vcmp.ge.f32.partialorder %v484_v59, 0.0  ;;  %v616_v10 = vmul.f32 0.01, %v548_v62  ;;  %v478_v13 = vpop.f32.mrf.mxu0  ;;  %v542_v14 = vpop.f32.mrf.mxu1 }
 0x100   : > { %1112 = vst [vmem:[%s1477_s21 + $0x68] sm:$0xff] %v1088_v3   ;;  %v643_v9 = vsel %vm579_vm8, %v527_v58, %v611_v6  ;;  %v540_v11 = vadd.f32 %v1461_v19, %v539_v55  ;;  %v487_v12 = vadd.f32 %v1155_v0, %v1461_v19  ;;  %vm584_vm10 = vcmp.ge.f32.partialorder %v548_v62, 0.0 }
 0x101   : > { %1103 = vst [vmem:[%s1477_s21 + $0x20] sm:$0xff] %v1043_v5   ;;  %v1083_v15 = vpack.c.bf16 %v643_v9, %v642_v8  ;;  %vm566_vm11 = vcmp.ge.f32.partialorder %v476_v63, 0.0  ;;  %v551_v16 = vadd.f32 %v1171_v1, %v1461_v19  ;;  %v632_v17 = vsel %vm568_vm9, %v484_v59, %v600_v7 }
 0x102   : > { %v598_v18 = vmul.f32 0.01, %v476_v63  ;;  %vm569_vm12 = vcmp.ge.f32.partialorder %v487_v12, 0.0  ;;  %v601_v20 = vmul.f32 0.01, %v487_v12  ;;  %v479_v22 = vadd.f32 %v1461_v19, %v478_v13 }
 0x103   : > { %1111 = vst [vmem:[%s1477_s21 + $0x60] sm:$0xff] %v1083_v15   ;;  %vm585_vm13 = vcmp.ge.f32.partialorder %v551_v16, 0.0  ;;  %v617_v21 = vmul.f32 0.01, %v551_v16  ;;  %v543_v23 = vadd.f32 %v1461_v19, %v542_v14  ;;  %v648_v24 = vsel %vm584_vm10, %v548_v62, %v616_v10 }
 0x104   : > { %vm582_vm14 = vcmp.ge.f32.partialorder %v540_v11, 0.0  ;;  %v614_v25 = vmul.f32 0.01, %v540_v11  ;;  %v633_v26 = vsel %vm569_vm12, %v487_v12, %v601_v20  ;;  %vm567_vm15 = vcmp.ge.f32.partialorder %v479_v22, 0.0 }
 0x105   : > { %v1058_v27 = vpack.c.bf16 %v633_v26, %v632_v17  ;;  %v649_v28 = vsel %vm585_vm13, %v551_v16, %v617_v21  ;;  %v599_v29 = vmul.f32 0.01, %v479_v22  ;;  %vm583_vm0 = vcmp.ge.f32.partialorder %v543_v23, 0.0 }
 0x106   : > { %v1098_v30 = vpack.c.bf16 %v649_v28, %v648_v24  ;;  %v615_v31 = vmul.f32 0.01, %v543_v23  ;;  %v630_v19 = vsel %vm566_vm11, %v476_v63, %v598_v18  ;;  %v646_v33 = vsel %vm582_vm14, %v540_v11, %v614_v25 }
 0x107   : > { %1106 = vst [vmem:[%s1477_s21 + $0x38] sm:$0xff] %v1058_v27   ;;  %v631_v32 = vsel %vm567_vm15, %v479_v22, %v599_v29 }
 0x108   : > { %1114 = vst [vmem:[%s1477_s21 + $0x78] sm:$0xff] %v1098_v30   ;;  %v1053_v34 = vpack.c.bf16 %v631_v32, %v630_v19  ;;  %v647_v35 = vsel %vm583_vm0, %v543_v23, %v615_v31 }
 0x109   : > { %v1093_v36 = vpack.c.bf16 %v647_v35, %v646_v33 }
 0x10a   : > { %1105 = vst [vmem:[%s1477_s21 + $0x30] sm:$0xff] %v1053_v34  }
 0x10b   : > { %1113 = vst [vmem:[%s1477_s21 + $0x70] sm:$0xff] %v1093_v36  }
 0x10c   : > { %1267 = shalt.err (!%p1264_p5)
}
 0x10d   : > { %s1268_s7 = scalar_lea.hbm %s1524_s29, 2048  ;;  %s1272_s10 = scalar_lea.hbm %s1580_s3, 4096 }
 0x10e   : > { %p1269_p6 = scmp.ne.s32.totalorder %s1524_s29, %s1268_s7  ;;  %p1273_p10 = scmp.lt.s32.totalorder %s1524_s29, %s1580_s3 }
 0x10f   : > { %p1274_p11 = scmp.lt.s32.totalorder %s1272_s10, %s1268_s7 }
 0x110   : > { %p1270_p7 = pnand %p1269_p6, %p1395_p4 }
 0x111   : > { %p1275_p12 = por %p1274_p11, %p1273_p10 }
 0x112   : > { %p1271_p9 = pneg %p1270_p7 }
 0x114   : > { %p1276_p13 = pnand %p1275_p12, %p1271_p9 }
 0x116   : > { %1279 = shalt.err (!%p1276_p13)
}
 0x117   : > { %s1333_s19 = smov 64   ;;  %s1334_s21 = smov 4  }
 0x118   : > { %1178 = dma.vmem_to_hbm [thread:$0]  (%p1395_p4), %s1526_s26, 2048, %s1524_s29, %s1532_s15, %s1333_s19, %s1333_s19, %s1334_s21  }
 0x119 PF: > { %p1184_p0 = scmp.ge.s32.totalorder %s1330_s17, 2  ;;  %s841_s23 = sand.u32 1, %s1310_s12  }
 0x11a   : > { %s842_s27 = scalar_lea.sflag [#allocation3], %s841_s23 }
 0x11b   : > { %p1181_p1 = pnand %p1184_p0, %p1402_p8 }
 0x11d   : > { %p1182_p2 = pneg %p1181_p1 }
 0x11f   : > { %1305 = dma.done.wait (%p1182_p2), %s842_s27, 2048  }
 0x120   : > { %1307 = vsyncadd (%p1182_p2), %s842_s27, 4294965248  ;;  %s16_s17 = sadd.s32 1, %s1330_s17   ;;  %s1583_s12 = smov %s1314_s13 }
 0x121   : > { %p13_p3 = scmp.ge.s32.totalorder %s16_s17, 4   ;;  %s1584_s13 = smov %s1318_s14 }
 0x122   : > { %s1585_s14 = smov %s1408_s25  ;;  %s1586_s15 = smov %s1326_s16 }
 0x123   : > { %s1587_s16 = smov %s1589_s20  ;;  %15 = sbr.rel (!%p13_p3) target bundleno = 4 (0x4), region = 67 }
 0x128   :  { %847 = vsyncpa [#allocation3], 1 }
 0x129   :  { %849 = vsyncpa [#allocation3 + $0x1], 1 }

</bundles_post_ra>
